<compile_context>
chip_gen: v6e
topology: v6e:2x2x1
jax: 0.10.0
libtpu: 0.0.40
codegen_flags: <defaults>
</compile_context>

<pallas_src>
import functools
import math

import jax
import jax.numpy as jnp
from jax.experimental import pallas as pl
from jax.experimental.pallas import tpu as pltpu


# ---------------------------------------------------------------------------
# VMEM-aware sizing helpers
# ---------------------------------------------------------------------------
def _tpu_vmem_capacity_bytes():
    """Per-TensorCore VMEM (128 MiB v5e/v6e, 64 MiB v7x); conservative fallback."""
    try:
        cap = getattr(pltpu.get_tpu_info(), "vmem_capacity_bytes", None)
        if cap:
            return int(cap)
    except Exception:
        pass
    return 64 * 1024 * 1024  # conservative: smallest current per-TC VMEM (v7x)


def _vmem_limits():
    cap = _tpu_vmem_capacity_bytes()
    limit = min(cap * 3 // 4, 100 * 1024 * 1024)     # requested scoped VMEM limit
    budget = max(limit - (4 << 20), 8 << 20)         # headroom for compiler scratch
    return cap, limit, budget


def _pick_tile(n, target, align=128):
    """Largest divisor of n <= target, preferring lane-aligned (x128) tiles, then
    sublane-aligned (x8), then any divisor; falls back to the full dimension.
    # TODO(synk): pad + masked tails instead of the full-dim fallback for awkward n.
    """
    if n <= target:
        return n
    divisors = [d for d in range(1, target + 1) if n % d == 0]
    for a in (align, 8, 1):
        aligned = [d for d in divisors if d % a == 0]
        if aligned:
            return max(aligned)
    return n


def _pick_head_batch(bh, per_head_bytes, budget_bytes, other_parallel_steps):
    """Heads per grid step: as many as fit the VMEM budget, preferring an even (>=2)
    total number of parallel grid steps so both v7x TensorCores stay balanced."""
    feasible = [g for g in range(1, bh + 1)
                if bh % g == 0 and g * per_head_bytes <= budget_bytes]
    if not feasible:
        return 1
    even = [g for g in feasible
            if (bh // g) * other_parallel_steps >= 2
            and ((bh // g) * other_parallel_steps) % 2 == 0]
    return max(even) if even else max(feasible)


def _mxu_dtype(in_dtype, mxu_bf16):
    if mxu_bf16 is None:
        # bf16 inputs -> bf16-native MXU path; f32 inputs keep f32 (module semantics).
        mxu_bf16 = jnp.dtype(in_dtype).itemsize <= 2
    return jnp.bfloat16 if mxu_bf16 else jnp.float32


# ---------------------------------------------------------------------------
# Path 1: context + normalized attention (module semantics)
# ---------------------------------------------------------------------------
def _sdpa_attn_kernel(q_ref, k_ref, v_ref, ctx_ref, attn_ref, *, scale, mxu_dtype):
    # q_ref: (G, tq, dk), k_ref: (G, Lk, dk), v_ref: (G, Lk, dv)
    # Fold 1/sqrt(d_k) into Q: tq*dk muls instead of tq*Lk.
    q = (q_ref[...].astype(jnp.float32) * scale).astype(mxu_dtype)
    # Contraction over d_k expressed directly -> no materialized K transpose.
    s = jnp.einsum("gqd,gkd->gqk", q, k_ref[...].astype(mxu_dtype),
                   preferred_element_type=jnp.float32)            # (G, tq, Lk) f32
    m = jnp.max(s, axis=-1, keepdims=True)
    e = jnp.exp(s - m)                                            # softmax math in f32
    inv = pl.reciprocal(jnp.sum(e, axis=-1, keepdims=True), approx=False)
    # Deferred normalization: P·V issues on the unnormalized e; the ctx rescale is only
    # (tq, dv) muls instead of a (tq, Lk) VPU multiply on the MXU critical path.
    ctx = jnp.einsum("gqk,gkd->gqd", e.astype(mxu_dtype), v_ref[...].astype(mxu_dtype),
                     preferred_element_type=jnp.float32)
    ctx_ref[...] = (ctx * inv).astype(ctx_ref.dtype)
    attn_ref[...] = (e * inv).astype(attn_ref.dtype)


def _attention_with_probs(q, k, v, *, d_k, attn_dtype, mxu_dtype):
    BH, Lq, dk = q.shape
    _, Lk, _ = k.shape
    dv = v.shape[-1]
    scale = 1.0 / math.sqrt(d_k)

    _, vmem_limit, budget = _vmem_limits()
    in_sz = q.dtype.itemsize
    attn_sz = jnp.dtype(attn_dtype).itemsize

    def per_head(tq):
        blocks = (tq * dk * in_sz                 # Q block
                  + Lk * (dk + dv) * in_sz        # K, V (full key length resident)
                  + tq * dv * in_sz               # ctx out
                  + tq * Lk * attn_sz)            # attn out
        interm = tq * Lk * 4 * 2 + tq * dv * 4    # f32 score/exp slab + ctx temp
        return 2 * blocks + interm                # x2: BlockSpec double-buffering

    # Largest lane-aligned Lq tile whose single-head footprint fits the budget.
    target = min(Lq, 512)
    tq = _pick_tile(Lq, target)
    while per_head(tq) > budget and target > 8:
        target //= 2
        tq = _pick_tile(Lq, target)
    # TODO(synk): if Lk is so large that even one head at minimal tq overflows VMEM,
    # tile the key axis too (two-pass / rescale-on-writeback) instead of spilling.

    G = _pick_head_batch(BH, per_head(tq), budget, other_parallel_steps=Lq // tq)
    grid = (BH // G, Lq // tq)

    kernel = functools.partial(_sdpa_attn_kernel, scale=scale, mxu_dtype=mxu_dtype)

    cost = pl.CostEstimate(
        flops=2 * BH * Lq * Lk * (dk + dv),
        transcendentals=BH * Lq * Lk,
        bytes_accessed=(q.size + k.size + v.size + BH * Lq * dv) * in_sz
                       + BH * Lq * Lk * attn_sz,
    )

    ctx, attn = pl.pallas_call(
        kernel,
        out_shape=(
            jax.ShapeDtypeStruct((BH, Lq, dv), q.dtype),
            jax.ShapeDtypeStruct((BH, Lq, Lk), attn_dtype),
        ),
        grid_spec=pltpu.PrefetchScalarGridSpec(
            num_scalar_prefetch=0,
            grid=grid,
            in_specs=[
                pl.BlockSpec((G, tq, dk), lambda i, j: (i, j, 0)),
                pl.BlockSpec((G, Lk, dk), lambda i, j: (i, 0, 0)),
                pl.BlockSpec((G, Lk, dv), lambda i, j: (i, 0, 0)),
            ],
            out_specs=[
                pl.BlockSpec((G, tq, dv), lambda i, j: (i, j, 0)),
                pl.BlockSpec((G, tq, Lk), lambda i, j: (i, j, 0)),
            ],
        ),
        compiler_params=pltpu.CompilerParams(
            dimension_semantics=("parallel", "parallel"),
            vmem_limit_bytes=vmem_limit,
        ),
        cost_estimate=cost,
    )(q, k, v)
    return ctx, attn


# ---------------------------------------------------------------------------
# Path 2: flash-style (context only, no O(Lq*Lk) HBM writeback)
# ---------------------------------------------------------------------------
def _sdpa_flash_kernel(q_ref, k_ref, v_ref, o_ref, qs_sc, m_sc, l_sc, acc_sc,
                       *, scale, mxu_dtype):
    kv = pl.program_id(2)

    @pl.when(kv == 0)
    def _():
        # Q is resident across the kv axis: scale (and cast) it exactly once here
        # instead of re-spending VALU slots on q*scale every kv step.
        qs_sc[...] = (q_ref[...].astype(jnp.float32) * scale).astype(qs_sc.dtype)
        m_sc[...] = jnp.full(m_sc.shape, -jnp.inf, dtype=m_sc.dtype)
        l_sc[...] = jnp.zeros(l_sc.shape, dtype=l_sc.dtype)
        acc_sc[...] = jnp.zeros(acc_sc.shape, dtype=acc_sc.dtype)

    s = jnp.einsum("gqd,gkd->gqk", qs_sc[...], k_ref[...].astype(mxu_dtype),
                   preferred_element_type=jnp.float32)             # (G, tq, tk) f32
    m_new = jnp.maximum(m_sc[...], s.max(axis=-1, keepdims=True))
    alpha = jnp.exp(m_sc[...] - m_new)
    p = jnp.exp(s - m_new)                                         # softmax math stays f32
    l_sc[...] = alpha * l_sc[...] + p.sum(axis=-1, keepdims=True)
    acc_sc[...] = alpha * acc_sc[...] + jnp.einsum(
        "gqk,gkd->gqd", p.astype(mxu_dtype), v_ref[...].astype(mxu_dtype),
        preferred_element_type=jnp.float32)
    m_sc[...] = m_new

    @pl.when(kv == pl.num_programs(2) - 1)
    def _():
        o_ref[...] = (acc_sc[...] *
                      pl.reciprocal(l_sc[...], approx=True)).astype(o_ref.dtype)


def _attention_flash(q, k, v, *, d_k, mxu_dtype):
    BH, Lq, dk = q.shape
    _, Lk, _ = k.shape
    dv = v.shape[-1]
    scale = 1.0 / math.sqrt(d_k)

    cap, vmem_limit, budget = _vmem_limits()
    in_sz = q.dtype.itemsize
    mxu_sz = jnp.dtype(mxu_dtype).itemsize

    # Lane-aligned kv tile; large tq is the lever on K/V HBM re-streaming (traffic ∝ Lq/tq).
    tk = _pick_tile(Lk, 512)

    def per_head(tq):
        blocks = (tq * dk * in_sz + tk * (dk + dv) * in_sz + tq * dv * in_sz)
        scratch = tq * dk * mxu_sz + tq * (dv + 2) * 4
        interm = tq * tk * 4 * 2
        return 2 * blocks + scratch + interm      # x2: BlockSpec double-buffering

    target = min(Lq, 1024 if cap >= (96 << 20) else 512)
    tq = _pick_tile(Lq, target)
    while per_head(tq) > budget and target > 8:
        target //= 2
        tq = _pick_tile(Lq, target)

    G = _pick_head_batch(BH, per_head(tq), budget, other_parallel_steps=Lq // tq)
    grid = (BH // G, Lq // tq, Lk // tk)

    kernel = functools.partial(_sdpa_flash_kernel, scale=scale, mxu_dtype=mxu_dtype)

    cost = pl.CostEstimate(
        flops=2 * BH * Lq * Lk * (dk + dv),
        transcendentals=BH * Lq * Lk,
        bytes_accessed=(q.size + BH * Lq * dv) * in_sz
                       + (k.size + v.size) * in_sz * (Lq // tq),
    )

    ctx = pl.pallas_call(
        kernel,
        out_shape=jax.ShapeDtypeStruct((BH, Lq, dv), q.dtype),
        grid_spec=pltpu.PrefetchScalarGridSpec(
            num_scalar_prefetch=0,
            grid=grid,
            in_specs=[
                pl.BlockSpec((G, tq, dk), lambda b, i, j: (b, i, 0)),
                pl.BlockSpec((G, tk, dk), lambda b, i, j: (b, j, 0)),
                pl.BlockSpec((G, tk, dv), lambda b, i, j: (b, j, 0)),
            ],
            out_specs=pl.BlockSpec((G, tq, dv), lambda b, i, j: (b, i, 0)),
            scratch_shapes=[
                pltpu.VMEM((G, tq, dk), mxu_dtype),    # pre-scaled Q (hoisted out of kv loop)
                pltpu.VMEM((G, tq, 1), jnp.float32),   # running max m
                pltpu.VMEM((G, tq, 1), jnp.float32),   # running denom l
                pltpu.VMEM((G, tq, dv), jnp.float32),  # context accumulator
            ],
        ),
        compiler_params=pltpu.CompilerParams(
            dimension_semantics=("parallel", "parallel", "arbitrary"),
            vmem_limit_bytes=vmem_limit,
        ),
        cost_estimate=cost,
    )(q, k, v)
    return ctx


# ---------------------------------------------------------------------------
# Public wrapper (matches the PyTorch module forward)
# ---------------------------------------------------------------------------
def scaled_dot_product_attention(Q, K, V, *, return_attn=True, attn_dtype=None,
                                 mxu_bf16=None):
    """
    Q: [batch, n_heads, len_q, d_k]
    K: [batch, n_heads, len_k, d_k]
    V: [batch, n_heads, len_k, d_v]
    Returns (context, attn) like the PyTorch module. With return_attn=False the
    flash-style path is used and attn is None (no O(Lq*Lk) HBM writeback).
    attn_dtype: dtype for the attention output (pass jnp.bfloat16 to halve the
    dominant HBM write of the return_attn path). mxu_bf16: force bf16 MXU operands
    (default: auto — bf16 inputs use bf16, f32 inputs stay f32 for module fidelity).
    """
    B, H, Lq, dk = Q.shape
    _, _, Lk, _ = K.shape
    dv = V.shape[-1]
    BH = B * H

    q = Q.reshape(BH, Lq, dk)
    k = K.reshape(BH, Lk, dk)
    v = V.reshape(BH, Lk, dv)

    mxu_dtype = _mxu_dtype(Q.dtype, mxu_bf16)

    if return_attn:
        if attn_dtype is None:
            attn_dtype = Q.dtype
        ctx, attn = _attention_with_probs(q, k, v, d_k=dk,
                                          attn_dtype=attn_dtype, mxu_dtype=mxu_dtype)
        return ctx.reshape(B, H, Lq, dv), attn.reshape(B, H, Lq, Lk)

    ctx = _attention_flash(q, k, v, d_k=dk, mxu_dtype=mxu_dtype)
    return ctx.reshape(B, H, Lq, dv), None


# ---------------------------------------------------------------------------
# Self-test
# ---------------------------------------------------------------------------
def _reference(Q, K, V, d_k):
    Qf, Kf, Vf = (x.astype(jnp.float32) for x in (Q, K, V))
    scores = jnp.einsum("bhqd,bhkd->bhqk", Qf, Kf) / math.sqrt(d_k)
    attn = jax.nn.softmax(scores, axis=-1)
    ctx = jnp.einsum("bhqk,bhkd->bhqd", attn, Vf)
    return ctx, attn


if __name__ == "__main__":
    d_k = d_v = 64

    # --- small shape from the module spec (single grid step, head-batched) ---
    batch, n_heads, len_q, len_k = 2, 2, 8, 8
    kq, kk, kv_ = jax.random.split(jax.random.PRNGKey(0), 3)
    Q = jax.random.normal(kq, (batch, n_heads, len_q, d_k), dtype=jnp.float32)
    K = jax.random.normal(kk, (batch, n_heads, len_k, d_k), dtype=jnp.float32)
    V = jax.random.normal(kv_, (batch, n_heads, len_k, d_v), dtype=jnp.float32)

    ctx, attn = scaled_dot_product_attention(Q, K, V)
    jax.block_until_ready((ctx, attn))
    ref_ctx, ref_attn = _reference(Q, K, V, d_k)
    assert jnp.allclose(ctx, ref_ctx, atol=1e-4, rtol=1e-4)
    assert jnp.allclose(attn, ref_attn, atol=1e-5, rtol=1e-5)

    # --- larger f32 shape: Lq tiling (attn path) + flash (online-softmax) path ---
    batch, n_heads, len_q, len_k = 2, 2, 512, 1024
    kq, kk, kv_ = jax.random.split(jax.random.PRNGKey(1), 3)
    Q = jax.random.normal(kq, (batch, n_heads, len_q, d_k), dtype=jnp.float32)
    K = jax.random.normal(kk, (batch, n_heads, len_k, d_k), dtype=jnp.float32)
    V = jax.random.normal(kv_, (batch, n_heads, len_k, d_v), dtype=jnp.float32)

    ctx, attn = scaled_dot_product_attention(Q, K, V)
    ctx_flash, _ = scaled_dot_product_attention(Q, K, V, return_attn=False)
    jax.block_until_ready((ctx, attn, ctx_flash))
    ref_ctx, ref_attn = _reference(Q, K, V, d_k)
    assert jnp.allclose(ctx, ref_ctx, atol=2e-3, rtol=2e-3)
    assert jnp.allclose(attn, ref_attn, atol=1e-4, rtol=1e-3)
    assert jnp.allclose(ctx_flash, ref_ctx, atol=2e-3, rtol=2e-3)

    # --- bf16 inputs: bf16 MXU operands + bf16 attn writeback (v6e/v7x fast path) ---
    Qb, Kb, Vb = (x.astype(jnp.bfloat16) for x in (Q, K, V))
    ctx_b, attn_b = scaled_dot_product_attention(Qb, Kb, Vb)
    ctx_bf, _ = scaled_dot_product_attention(Qb, Kb, Vb, return_attn=False)
    jax.block_until_ready((ctx_b, attn_b, ctx_bf))
    ref_ctx_b, ref_attn_b = _reference(Qb, Kb, Vb, d_k)
    assert jnp.allclose(ctx_b.astype(jnp.float32), ref_ctx_b, atol=3e-2, rtol=3e-2)
    assert jnp.allclose(attn_b.astype(jnp.float32), ref_attn_b, atol=5e-3, rtol=5e-2)
    assert jnp.allclose(ctx_bf.astype(jnp.float32), ref_ctx_b, atol=3e-2, rtol=3e-2)

    print("KERNEL_OK")
</pallas_src>

<mosaic_0001>
module attributes {stable_mosaic.version = 11 : i64} {
  func.func @_sdpa_attn_kernel(%arg0: i32, %arg1: i32, %arg2: memref<2x8x64xf32, #tpu.memory_space<vmem>>, %arg3: memref<2x8x64xf32, #tpu.memory_space<vmem>>, %arg4: memref<2x8x64xf32, #tpu.memory_space<vmem>>, %arg5: memref<2x8x64xf32, #tpu.memory_space<vmem>>, %arg6: memref<2x8x8xf32, #tpu.memory_space<vmem>>) attributes {dimension_semantics = [#tpu.dimension_semantics<parallel>, #tpu.dimension_semantics<parallel>], iteration_bounds = array<i64: 2, 1>, scalar_prefetch = 0 : i64, scratch_operands = 0 : i64, tpu.core_type = #tpu.core_type<tc>, window_params = [{transform_indices = @transform_0, window_bounds = array<i64: 2, 8, 64>}, {transform_indices = @transform_1, window_bounds = array<i64: 2, 8, 64>}, {transform_indices = @transform_2, window_bounds = array<i64: 2, 8, 64>}, {transform_indices = @transform_3, window_bounds = array<i64: 2, 8, 64>}, {transform_indices = @transform_4, window_bounds = array<i64: 2, 8, 8>}]} {
    %c0 = arith.constant 0 : index
    %c0_0 = arith.constant 0 : index
    %c0_1 = arith.constant 0 : index
    %0 = vector.load %arg2[%c0, %c0_0, %c0_1] : memref<2x8x64xf32, #tpu.memory_space<vmem>>, vector<2x8x64xf32>
    %cst = arith.constant 1.250000e-01 : f32
    %1 = vector.broadcast %cst : f32 to vector<2x8x64xf32>
    %2 = arith.mulf %0, %1 : vector<2x8x64xf32>
    %c0_2 = arith.constant 0 : index
    %c0_3 = arith.constant 0 : index
    %c0_4 = arith.constant 0 : index
    %3 = vector.load %arg3[%c0_2, %c0_3, %c0_4] : memref<2x8x64xf32, #tpu.memory_space<vmem>>, vector<2x8x64xf32>
    "tpu.trace_start"() <{level = 10 : i32, message = "gqd,gkd->gqk"}> : () -> ()
    %cst_5 = arith.constant dense<0.000000e+00> : vector<2x8x8xf32>
    %4 = tpu.matmul %2, %3, %cst_5 {dimension_numbers = #tpu.dot_dimension_numbers<[2], [2], [1], [1], [0, 0, 0, 1, 1, 1], [0], [0]>} : vector<2x8x64xf32>, vector<2x8x64xf32>, vector<2x8x8xf32> -> vector<2x8x8xf32>
    "tpu.trace_stop"() : () -> ()
    %cst_6 = arith.constant dense<0xFF800000> : vector<2x8xf32>
    %5 = vector.multi_reduction <maximumf>, %4, %cst_6 [2] : vector<2x8x8xf32> to vector<2x8xf32>
    %6 = vector.shape_cast %5 : vector<2x8xf32> to vector<2x8x1xf32>
    %7 = vector.broadcast %6 : vector<2x8x1xf32> to vector<2x8x8xf32>
    %8 = arith.subf %4, %7 : vector<2x8x8xf32>
    %9 = math.exp %8 : vector<2x8x8xf32>
    %cst_7 = arith.constant dense<0.000000e+00> : vector<2x8xf32>
    %10 = vector.multi_reduction <add>, %9, %cst_7 [2] : vector<2x8x8xf32> to vector<2x8xf32>
    %11 = vector.shape_cast %10 : vector<2x8xf32> to vector<2x8x1xf32>
    %12 = tpu.reciprocal %11 : vector<2x8x1xf32> -> vector<2x8x1xf32>
    %c0_8 = arith.constant 0 : index
    %c0_9 = arith.constant 0 : index
    %c0_10 = arith.constant 0 : index
    %13 = vector.load %arg4[%c0_8, %c0_9, %c0_10] : memref<2x8x64xf32, #tpu.memory_space<vmem>>, vector<2x8x64xf32>
    "tpu.trace_start"() <{level = 10 : i32, message = "gqk,gkd->gqd"}> : () -> ()
    %cst_11 = arith.constant dense<0.000000e+00> : vector<2x8x64xf32>
    %14 = tpu.matmul %9, %13, %cst_11 {dimension_numbers = #tpu.dot_dimension_numbers<[2], [1], [1], [2], [0, 0, 0, 1, 1, 2], [0], [0]>} : vector<2x8x8xf32>, vector<2x8x64xf32>, vector<2x8x64xf32> -> vector<2x8x64xf32>
    "tpu.trace_stop"() : () -> ()
    %15 = vector.broadcast %12 : vector<2x8x1xf32> to vector<2x8x64xf32>
    %16 = arith.mulf %14, %15 : vector<2x8x64xf32>
    %c0_12 = arith.constant 0 : index
    %c0_13 = arith.constant 0 : index
    %c0_14 = arith.constant 0 : index
    %17 = vector.load %arg5[%c0_12, %c0_13, %c0_14] : memref<2x8x64xf32, #tpu.memory_space<vmem>>, vector<2x8x64xf32>
    tpu.vector_store %arg5[%c0_12, %c0_13, %c0_14], %16 {strides = array<i32>} : memref<2x8x64xf32, #tpu.memory_space<vmem>>, vector<2x8x64xf32>,
    %18 = vector.broadcast %12 : vector<2x8x1xf32> to vector<2x8x8xf32>
    %19 = arith.mulf %9, %18 : vector<2x8x8xf32>
    %c0_15 = arith.constant 0 : index
    %c0_16 = arith.constant 0 : index
    %c0_17 = arith.constant 0 : index
    %20 = vector.load %arg6[%c0_15, %c0_16, %c0_17] : memref<2x8x8xf32, #tpu.memory_space<vmem>>, vector<2x8x8xf32>
    tpu.vector_store %arg6[%c0_15, %c0_16, %c0_17], %19 {strides = array<i32>} : memref<2x8x8xf32, #tpu.memory_space<vmem>>, vector<2x8x8xf32>,
    return
  }
  func.func @transform_0(%arg0: i32, %arg1: i32) -> (i32, i32, i32) {
    %c0_i32 = arith.constant 0 : i32
    %c0_i32_0 = arith.constant 0 : i32
    return %arg0, %arg1, %c0_i32 : i32, i32, i32
  }
  func.func @transform_1(%arg0: i32, %arg1: i32) -> (i32, i32, i32) {
    %c0_i32 = arith.constant 0 : i32
    %c0_i32_0 = arith.constant 0 : i32
    %c0_i32_1 = arith.constant 0 : i32
    return %arg0, %c0_i32, %c0_i32_0 : i32, i32, i32
  }
  func.func @transform_2(%arg0: i32, %arg1: i32) -> (i32, i32, i32) {
    %c0_i32 = arith.constant 0 : i32
    %c0_i32_0 = arith.constant 0 : i32
    %c0_i32_1 = arith.constant 0 : i32
    return %arg0, %c0_i32, %c0_i32_0 : i32, i32, i32
  }
  func.func @transform_3(%arg0: i32, %arg1: i32) -> (i32, i32, i32) {
    %c0_i32 = arith.constant 0 : i32
    %c0_i32_0 = arith.constant 0 : i32
    return %arg0, %arg1, %c0_i32 : i32, i32, i32
  }
  func.func @transform_4(%arg0: i32, %arg1: i32) -> (i32, i32, i32) {
    %c0_i32 = arith.constant 0 : i32
    %c0_i32_0 = arith.constant 0 : i32
    return %arg0, %arg1, %c0_i32 : i32, i32, i32
  }
}

</mosaic_0001>

<bundles_post_ra>
// kernel: tpu_custom_call.1
= control target key start
LH: loop header
LB: loop body
LE: loop exit
PB: predicated region body
PF: predicated region fallthrough
CT: control target
= control target key end

     0   :  { %s1534_s0 = inlined_call_operand.hbm [shape: f32[4,8,64], index: 0, kind: input, shape index: {}]   ;;  %s1535_s1 = inlined_call_operand.hbm [shape: f32[4,8,64], index: 1, kind: input, shape index: {}]   ;;  %s1536_s2 = inlined_call_operand.hbm [shape: f32[4,8,64], index: 2, kind: input, shape index: {}]   ;;  %s1537_s3 = inlined_call_operand.hbm [shape: f32[4,8,64], index: 3, kind: output, shape index: {0}]   ;;  %s1538_s4 = inlined_call_operand.hbm [shape: f32[4,8,8], index: 4, kind: output, shape index: {1}]  }
   0x1   :  { %1545 = sst [smem:[#allocation19_spill]] %s1535_s1 }
   0x2   :  { %10 = vsyncpa [#allocation3], 0 }
   0x3   :  { %12 = vsyncpa [#allocation3 + $0x1], 0 }
   0x4   :  { %13 = vsyncpa [#allocation6], 0 }
   0x5   :  { %15 = vsyncpa [#allocation6 + $0x1], 0 }
   0x6   :  { %16 = vsyncpa [#allocation4], 0 }
   0x7   :  { %18 = vsyncpa [#allocation4 + $0x1], 0 }
   0x8   :  { %19 = vsyncpa [#allocation10], 0 }
   0x9   :  { %21 = vsyncpa [#allocation10 + $0x1], 0  ;;  %s1256_s15 = smov 0   ;;  %s1258_s16 = smov 0  }
   0xa   :  { %s1260_s17 = smov 0   ;;  %s1262_s18 = smov 0  }
   0xb   :  { %s1264_s19 = smov 0   ;;  %s1266_s20 = smov 0  }
   0xc LB: > { %1546 = sst [smem:[#allocation15_spill]] %s1214_s19  ;;  %s1287_s21 = sadd.s32 4294967295, %s1218_s20   ;;  %s1218_s20 = sphi %s1266_s20, %s27_s20   ;;  %s1214_s19 = sphi %s1264_s19, %s1563_s19   ;;  %s1210_s18 = sphi %s1262_s18, %s1562_s18   ;;  %s1206_s17 = sphi %s1260_s17, %s1566_s17   ;;  %s1202_s16 = sphi %s1258_s16, %s1565_s16   ;;  %s1198_s15 = sphi %s1256_s15, %s1564_s15  }
   0xd   : > { %s864_s22 = sadd.s32 4294967294, %s1218_s20   ;;  %s39_s23 = sadd.s32 1, %s1214_s19 }
   0xe   : > { %s48_s24 = sadd.s32 1, %s1206_s17  ;;  %p41_p0 = scmp.ge.s32.totalorder %s39_s23, 2 }
   0xf   : > { %p55_p1 = scmp.ne.s32.totalorder %s1206_s17, %s1202_s16  ;;  %p56_p2 = scmp.eq.s32.totalorder %s1218_s20, 0 }
  0x10   : > { %p61_p3 = scmp.ne.s32.totalorder %s1202_s16, %s1198_s15  ;;  %s1568_s23 = smov (%p41_p0, %s39_s23), 0 }
  0x11   : > { %1547 = sst [smem:[#allocation16_spill]] %s1568_s23  ;;  %p1299_p4 = por %p56_p2, %p55_p1 }
  0x12   : > { %p62_p5 = scmp.eq.s32.totalorder %s1287_s21, 0  ;;  %s43_s26 = ssub.s32 %s1214_s19, %s1568_s23 }
  0x13   : > { %p139_p6 = scmp.eq.s32.totalorder %s1287_s21, 1  ;;  %p46_p7 = scmp.eq.s32.totalorder %s43_s26, 0 }
  0x14   : > { %p1307_p8 = por %p62_p5, %p61_p3  ;;  %p145_p10 = scmp.eq.s32.totalorder %s864_s22, 1 }
  0x15   : > { %p1311_p9 = por %p139_p6, %p55_p1  ;;  %p956_p13 = scmp.lt.s32.totalorder %s1218_s20, 2 }
  0x16   : > { %s1316_s29 = scalar_select %p46_p7, %s1206_s17, %s48_s24  }
  0x17   : > { %p1318_p11 = por %p145_p10, %p61_p3  ;;  %s1539_s5 = sand.u32 1, %s1206_s17  }
  0x18   : > { %1551 = sst [smem:[#allocation17_spill]] %s1316_s29  ;;  %s1327_s6 = sshll.u32 %s1539_s5, 4 }
  0x19   : > { %s1552_s30 = scalar_select %p1318_p11, 1, 0 }
  0x1a   : > { %s1330_s7 = sshll.u32 %s1214_s19, 8  ;;  %p1334_p0 = pnand %p956_p13, %p1299_p4 }
  0x1b   : > { %1553 = sst [smem:[#allocation18_spill]] %s1552_s30  ;;  %s215_s9 = sand.u32 1, %s1218_s20  }
  0x1c   : > { %s1555_s1 = sld [smem:[#allocation19_spill]]  ;;  %s219_s13 = scalar_lea.vmem [#allocation5], %s1327_s6 }
  0x1d   : > { %s226_s14 = sshll.u32 %s219_s13, 4  ;;  %p876_p1 = scmp.ge.s32.totalorder %s1218_s20, 1  ;;  %s227_s14 = int_to_ptr.vmem [resolvable:$true] %s226_s14 }
  0x1e   : > { %p255_p2 = scmp.lt.s32.totalorder %s1218_s20, 3  ;;  %s1346_s22 = scalar_lea.sflag [#allocation6], %s215_s9 }
  0x1f   : > { %p1022_p3 = pneg %p1334_p0  ;;  %s1033_s24 = scalar_lea.vmem %s227_s14, 256 }
  0x20   : > { %p1034_p4 = scmp.ne.s32.totalorder %s227_s14, %s1033_s24  ;;  %s1220_s25 = smov [#allocation5]  }
  0x21   : > { %s1038_s26 = sshll.u32 %s1220_s25, 4  ;;  %s1039_s26 = int_to_ptr.vmem [resolvable:$false] %s1038_s26 }
  0x22   : > { %s225_s12 = scalar_lea.hbm %s1555_s1, %s1330_s7  ;;  %p1036_p5 = pnand %p1034_p4, %p1022_p3 }
  0x23   : > { %s1040_s10 = scalar_lea.vmem %s1039_s26, 512  ;;  %p1041_p7 = scmp.lt.s32.totalorder %s227_s14, %s1039_s26 }
  0x24   : > { %p1037_p6 = pneg %p1036_p5  ;;  %p1042_p10 = scmp.lt.s32.totalorder %s1040_s10, %s1033_s24 }
  0x26   : > { %p1043_p13 = por %p1042_p10, %p1041_p7 }
  0x28   : > { %p1044_p12 = pnand %p1043_p13, %p1037_p6 }
  0x2a   : > { %1047 = shalt.err (!%p1044_p12)
}
  0x2b   : > { %s1543_s11 = smov 128   ;;  %s1222_s9 = smov 8  }
  0x2c   : > { %945 = dma.hbm_to_vmem [thread:$0]  (!%p1334_p0), %s225_s12, 256, %s227_s14, %s1346_s22, %s1543_s11, %s1543_s11, %s1222_s9  }
  0x2d   : > { %p1363_p4 = pnand %p876_p1, %p255_p2  ;;  %s204_s26 = scalar_lea.hbm %s1534_s0, %s1330_s7 }
  0x2e   : > { %s197_s10 = scalar_lea.vmem [#allocation2], %s1327_s6  ;;  %s246_s19 = scalar_lea.hbm %s1536_s2, %s1330_s7 }
  0x2f   : > { %s205_s5 = sshll.u32 %s197_s10, 4  ;;  %s1557_s29 = sand.u32 1, %s1206_s17   ;;  %s206_s5 = int_to_ptr.vmem [resolvable:$true] %s205_s5 }
  0x30   : > { %s194_s30 = scalar_lea.sflag [#allocation3], %s1557_s29  ;;  %s1061_s12 = scalar_lea.vmem %s206_s5, 256 }
  0x31   : > { %p1062_p12 = scmp.ne.s32.totalorder %s206_s5, %s1061_s12  ;;  %s1223_s14 = smov [#allocation2]  }
  0x32   : > { %s1066_s11 = sshll.u32 %s1223_s14, 4  ;;  %s1067_s11 = int_to_ptr.vmem [resolvable:$false] %s1066_s11 }
  0x33   : > { %p1064_p1 = pnand %p1062_p12, %p1022_p3  ;;  %s1068_s24 = scalar_lea.vmem %s1067_s11, 512 }
  0x34   : > { %p1069_p5 = scmp.lt.s32.totalorder %s206_s5, %s1067_s11  ;;  %p1070_p6 = scmp.lt.s32.totalorder %s1068_s24, %s1061_s12 }
  0x35   : > { %p1065_p2 = pneg %p1064_p1 }
  0x36   : > { %p1071_p7 = por %p1070_p6, %p1069_p5 }
  0x38   : > { %p1072_p10 = pnand %p1071_p7, %p1065_p2 }
  0x3a   : > { %1075 = shalt.err (!%p1072_p10)
}
  0x3b   : > { %s1558_s1 = smov 128   ;;  %s240_s23 = scalar_lea.vmem [#allocation7], %s1327_s6 }
  0x3c   : > { %942 = dma.hbm_to_vmem [thread:$0]  (!%p1334_p0), %s204_s26, 256, %s206_s5, %s194_s30, %s1558_s1, %s1558_s1, %s1222_s9  }
  0x3d   : > { %s247_s29 = sshll.u32 %s240_s23, 4  ;;  %s1224_s11 = smov [#allocation7]   ;;  %s248_s29 = int_to_ptr.vmem [resolvable:$true] %s247_s29 }
  0x3e   : > { %s1089_s25 = scalar_lea.vmem %s248_s29, 256  ;;  %s1094_s10 = sshll.u32 %s1224_s11, 4  ;;  %s1095_s10 = int_to_ptr.vmem [resolvable:$false] %s1094_s10 }
  0x3f   : > { %p1090_p13 = scmp.ne.s32.totalorder %s248_s29, %s1089_s25  ;;  %s1096_s12 = scalar_lea.vmem %s1095_s10, 512 }
  0x40   : > { %p1097_p2 = scmp.lt.s32.totalorder %s248_s29, %s1095_s10  ;;  %p1098_p5 = scmp.lt.s32.totalorder %s1096_s12, %s1089_s25 }
  0x41   : > { %p1092_p12 = pnand %p1090_p13, %p1022_p3 }
  0x42   : > { %p1099_p6 = por %p1098_p5, %p1097_p2 }
  0x43   : > { %p1093_p1 = pneg %p1092_p12 }
  0x45   : > { %p1100_p7 = pnand %p1099_p6, %p1093_p1 }
  0x47   : > { %1103 = shalt.err (!%p1100_p7)
}
  0x48   : > { %948 = dma.hbm_to_vmem [thread:$0]  (!%p1334_p0), %s246_s19, 256, %s248_s29, %s1346_s22, %s1558_s1, %s1558_s1, %s1222_s9  }
  0x49   : > { %259 = sbr.rel (%p1363_p4) target bundleno = 650 (0x28a), region = 32  ;;  %s1404_s6 = sand.u32 (!%p1363_p4), 1, %s1202_s16  }
  0x4a   : > { %s1407_s8 = sshll.u32 (!%p1363_p4), %s1404_s6, 4  ;;  %s262_s26 = scalar_lea.sflag (!%p1363_p4), [#allocation3], %s1404_s6 }
  0x4b   : > { %s265_s14 = scalar_lea.vmem (!%p1363_p4), [#allocation2], %s1407_s8 }
  0x4e   : > { %1181 = dma.done.wait (%p1307_p8), %s262_s26, 256  }
  0x4f   : > { %1183 = vsyncadd (%p1307_p8), %s262_s26, 4294967040  ;;  %s270_s19 = sand.u32 1, %s1287_s21   ;;  %s274_s22 = scalar_lea.vmem [#allocation5], %s1407_s8 }
  0x50   : > { %s271_s7 = scalar_lea.sflag [#allocation6], %s270_s19 }
  0x51   : > { %1185 = dma.done.wait (%p1307_p8), %s271_s7, 512  }
  0x52   : > { %1187 = vsyncadd (%p1307_p8), %s271_s7, 4294966784  ;;  %v1225_v0 = vmov 0.0   ;;  %vm1226_vm0 = vmmov 0   ;;  %vm334_vm1 = vcmask 523264   ;;  %v332_v1 = vld [vmem:[%s274_s22] sm:$0xff]  ;;  %v333_v2 = vld [vmem:[%s274_s22 + $0x8] sm:$0xff] }
  0x53   : > { %909 = vmatprep.subr.mxu0 %v1225_v0  ;;  %914 = vmatprep.subr.mxu1 %v1225_v0  ;;  %v328_v3 = vld [vmem:[%s265_s14] sm:$0xff]  ;;  %v329_v5 = vld [vmem:[%s265_s14 + $0x8] sm:$0xff]  ;;  %vm487_vm2 = vcmask 64512   ;;  %s283_s21 = scalar_lea.vmem [#allocation7], %s1407_s8  ;;  %s899_s27 = sshll.u32 %s1210_s18, 8 }
  0x54   : > { %911 = vmatprep.mubr.msk.f32.mxu0 %vm1226_vm0, %v1225_v0  ;;  %916 = vmatprep.mubr.msk.f32.mxu1 %vm1226_vm0, %v1225_v0  ;;  %v330_v4 = vmul.f32 0.125, %v328_v3  ;;  %v331_v6 = vmul.f32 0.125, %v329_v5  ;;  %v508_v13 = vld [vmem:[%s283_s21] sm:$0xff]  ;;  %v509_v14 = vld [vmem:[%s283_s21 + $0x8] sm:$0xff]  ;;  %s322_s9 = scalar_lea.vmem [#allocation9], %s1407_s8  ;;  %s1444_s23 = scalar_lea.hbm %s1538_s4, %s899_s27 }
  0x55   : > { %910 = vmatpush3.xpose.msk.msra.mxu0 %vm334_vm1, %v332_v1  ;;  %915 = vmatpush3.xpose.msk.msra.mxu1 %vm334_vm1, %v333_v2  ;;  %s701_s13 = sshll.u32 %s322_s9, 4  ;;  %s670_s29 = scalar_lea.sflag [#allocation10], %s1404_s6  ;;  %s1446_s13 = int_to_ptr.vmem [resolvable:$true] %s701_s13 }
  0x56   : > { %919 = vmatprep.subr.mxu0 %v1225_v0  ;;  %924 = vmatprep.subr.mxu1 %v1225_v0  ;;  %s1104_s25 = scalar_lea.vmem %s1446_s13, 256  ;;  %s1227_s11 = smov [#allocation9]  }
  0x57   : > { %p1105_p8 = scmp.ne.s32.totalorder %s1446_s13, %s1104_s25  ;;  %s1108_s10 = sshll.u32 %s1227_s11, 4  ;;  %s1109_s10 = int_to_ptr.vmem [resolvable:$false] %s1108_s10 }
  0x58   : > { %912 = vmatmul.mubr.msk.f32.vlgmr.msra.gmra.mxu0 %vm334_vm1, %v330_v4  ;;  %917 = vmatmul.mubr.msk.f32.vlgmr.msra.gmra.mxu1 %vm334_vm1, %v331_v6  ;;  %s1110_s12 = scalar_lea.vmem %s1109_s10, 512  ;;  %p1111_p4 = scmp.lt.s32.totalorder %s1446_s13, %s1109_s10 }
  0x59   : > { %921 = vmatprep.mubr.msk.f32.mxu0 %vm1226_vm0, %v1225_v0  ;;  %926 = vmatprep.mubr.msk.f32.mxu1 %vm1226_vm0, %v1225_v0  ;;  %p1106_p0 = pnand %p1105_p8, %p1311_p9  ;;  %p1112_p10 = scmp.lt.s32.totalorder %s1110_s12, %s1104_s25 }
  0x5a   : > { %920 = vmatpush3.msra.mxu0 %v508_v13  ;;  %925 = vmatpush3.msra.mxu1 %v509_v14 }
  0x5b   : > { %p1107_p3 = pneg %p1106_p0  ;;  %p1113_p13 = por %p1112_p10, %p1111_p4 }
  0x5d   : > { %p1114_p12 = pnand %p1113_p13, %p1107_p3 }
 0x118   : > { %v407_v7 = vpop.f32.mrf.mxu0  ;;  %v483_v8 = vpop.f32.mrf.mxu1 }
 0x119   : > { %v488_v9 = vsel %vm487_vm2, %v407_v7, -inf  ;;  %v491_v12 = vsel %vm487_vm2, %v483_v8, -inf }
 0x11a   : > { %489 = vmax.xlane.f32.xlu0 %v488_v9  ;;  %v913_v10 = vpop.f32.mrf.mxu0  ;;  %v918_v11 = vpop.f32.mrf.mxu1 }
 0x11e   : > { %492 = vmax.xlane.f32.xlu0 %v491_v12 }
 0x1a3   : > { %v490_v15 = vpop.xlane.xlu0 %489 }
 0x1a4   : > { %v494_v16 = vsub.f32 %v407_v7, %v490_v15 }
 0x1a6   : > { %v496_v17 = vmul.f32 1.442695, %v494_v16 }
 0x1a7   : > { %v493_v18 = vpop.xlane.xlu0 %492 }
 0x1a8   : > { %1012 = vpow2.f32 %v496_v17  ;;  %v495_v19 = vsub.f32 %v483_v8, %v493_v18 }
 0x1aa   : > { %v498_v20 = vmul.f32 1.442695, %v495_v19 }
 0x1ac   : > { %1014 = vpow2.f32 %v498_v20 }
 0x1b5   : > { %v1013_v21 = vpop.eup %1012 }
 0x1b6   : > { %922 = vmatmul.mubr.msk.f32.vlgmr.msra.gmra.mxu0 %vm487_vm2, %v1013_v21  ;;  %v500_v22 = vsel %vm487_vm2, %v1013_v21, 0.0 }
 0x1b7   : > { %501 = vadd.xlane.f32.xlu1 %v500_v22 }
 0x1b9   : > { %v1015_v23 = vpop.eup %1014 }
 0x1ba   : > { %927 = vmatmul.mubr.msk.f32.vlgmr.msra.gmra.mxu1 %vm487_vm2, %v1015_v23  ;;  %v503_v24 = vsel %vm487_vm2, %v1015_v23, 0.0 }
 0x1bb   : > { %504 = vadd.xlane.f32.xlu1 %v503_v24 }
 0x240   : > { %v502_v25 = vpop.xlane.xlu1 %501 }
 0x241   : > { %1016 = vrcp.f32 %v502_v25 }
 0x244   : > { %v505_v26 = vpop.xlane.xlu1 %504 }
 0x245   : > { %1018 = vrcp.f32 %v505_v26 }
 0x24e   : > { %v1017_v27 = vpop.eup %1016 }
 0x24f   : > { %v660_v28 = vmul.f32 %v1017_v27, %v1013_v21 }
 0x251   : > { %662 = vst.msk [vmem:[%s322_s9] sm:$0xff] %vm487_vm2, %v660_v28 }
 0x252   : > { %v1019_v29 = vpop.eup %1018 }
 0x253   : > { %v661_v30 = vmul.f32 %v1019_v29, %v1015_v23 }
 0x255   : > { %663 = vst.msk [vmem:[%s322_s9 + $0x8] sm:$0xff] %vm487_vm2, %v661_v30 }
 0x256   : > { %1117 = shalt.err (!%p1114_p12)
}
 0x257   : > { %s1118_s30 = scalar_lea.hbm %s1444_s23, 256  ;;  %s1122_s14 = scalar_lea.hbm %s1538_s4, 512 }
 0x258   : > { %p1119_p1 = scmp.ne.s32.totalorder %s1444_s23, %s1118_s30  ;;  %p1123_p6 = scmp.lt.s32.totalorder %s1444_s23, %s1538_s4 }
 0x259   : > { %p1124_p7 = scmp.lt.s32.totalorder %s1122_s14, %s1118_s30 }
 0x25a   : > { %p1120_p2 = pnand %p1119_p1, %p1311_p9 }
 0x25b   : > { %p1125_p8 = por %p1124_p7, %p1123_p6 }
 0x25c   : > { %p1121_p5 = pneg %p1120_p2 }
 0x25e   : > { %p1126_p0 = pnand %p1125_p8, %p1121_p5 }
 0x260   : > { %1129 = shalt.err (!%p1126_p0)
}
 0x261   : > { %s1228_s22 = smov 128   ;;  %s1229_s21 = smov 8  }
 0x262   : > { %936 = dma.vmem_to_hbm [thread:$0]  (%p1311_p9), %s1446_s13, 256, %s1444_s23, %s670_s29, %s1228_s22, %s1228_s22, %s1229_s21  }
 0x263   : > { %s315_s9 = scalar_lea.vmem [#allocation8], %s1407_s8  ;;  %s1484_s13 = scalar_lea.hbm %s1537_s3, %s899_s27 }
 0x264   : > { %s684_s24 = sshll.u32 %s315_s9, 4  ;;  %s665_s8 = scalar_lea.sflag [#allocation4], %s1404_s6  ;;  %s1477_s24 = int_to_ptr.vmem [resolvable:$true] %s684_s24 }
 0x265   : > { %s1130_s23 = scalar_lea.vmem %s1477_s24, 256  ;;  %s1230_s29 = smov [#allocation8]  }
 0x266   : > { %p1131_p3 = scmp.ne.s32.totalorder %s1477_s24, %s1130_s23  ;;  %s1134_s11 = sshll.u32 %s1230_s29, 4  ;;  %s1135_s11 = int_to_ptr.vmem [resolvable:$false] %s1134_s11 }
 0x267   : > { %s1136_s10 = scalar_lea.vmem %s1135_s11, 512  ;;  %p1137_p13 = scmp.lt.s32.totalorder %s1477_s24, %s1135_s11 }
 0x268   : > { %p1132_p4 = pnand %p1131_p3, %p1311_p9  ;;  %p1138_p12 = scmp.lt.s32.totalorder %s1136_s10, %s1130_s23 }
 0x26a   : > { %p1133_p10 = pneg %p1132_p4  ;;  %p1139_p1 = por %p1138_p12, %p1137_p13 }
 0x26c   : > { %p1140_p2 = pnand %p1139_p1, %p1133_p10 }
 0x276   : > { %v579_v31 = vpop.f32.mrf.mxu0 }
 0x277   : > { %v656_v32 = vmul.f32 %v1017_v27, %v579_v31 }
 0x278   : > { %v923_v33 = vpop.f32.mrf.mxu0 }
 0x279   : > { %658 = vst.msk [vmem:[%s315_s9] sm:$0xff] %vm334_vm1, %v656_v32 }
 0x27a   : > { %v652_v34 = vpop.f32.mrf.mxu1 }
 0x27b   : > { %v657_v35 = vmul.f32 %v1019_v29, %v652_v34 }
 0x27c   : > { %v928_v36 = vpop.f32.mrf.mxu1 }
 0x27d   : > { %659 = vst.msk [vmem:[%s315_s9 + $0x8] sm:$0xff] %vm334_vm1, %v657_v35 }
 0x27e   : > { %1143 = shalt.err (!%p1140_p2)
}
 0x27f   : > { %s1144_s18 = scalar_lea.hbm %s1484_s13, 256  ;;  %s1148_s12 = scalar_lea.hbm %s1537_s3, 512 }
 0x280   : > { %p1145_p5 = scmp.ne.s32.totalorder %s1484_s13, %s1144_s18  ;;  %p1149_p8 = scmp.lt.s32.totalorder %s1484_s13, %s1537_s3 }
 0x281   : > { %p1150_p0 = scmp.lt.s32.totalorder %s1148_s12, %s1144_s18 }
 0x282   : > { %p1146_p6 = pnand %p1145_p5, %p1311_p9 }
 0x283   : > { %p1151_p3 = por %p1150_p0, %p1149_p8 }
 0x284   : > { %p1147_p7 = pneg %p1146_p6 }
 0x286   : > { %p1152_p4 = pnand %p1151_p3, %p1147_p7 }
 0x288   : > { %1155 = shalt.err (!%p1152_p4)
}
 0x289   : > { %935 = dma.vmem_to_hbm [thread:$0]  (%p1311_p9), %s1477_s24, 256, %s1484_s13, %s665_s8, %s1228_s22, %s1228_s22, %s1229_s21  }
 0x28a PF: > { %s716_s14 = sand.u32 1, %s1198_s15   ;;  %p1560_p10 = scmp.ge.s32.totalorder %s1218_s20, 2 }
 0x28b   : > { %s717_s19 = scalar_lea.sflag [#allocation4], %s716_s14 }
 0x28c   : > { %p950_p13 = pnand %p1560_p10, %p1318_p11 }
 0x28e   : > { %p951_p12 = pneg %p950_p13 }
 0x290   : > { %1189 = dma.done.wait (%p951_p12), %s717_s19, 256  }
 0x291   : > { %1191 = vsyncadd (%p951_p12), %s717_s19, 4294967040  ;;  %s726_s7 = scalar_lea.sflag [#allocation10], %s716_s14 }
 0x292   : > { %1193 = dma.done.wait (%p951_p12), %s726_s7, 256  }
 0x293   : > { %1195 = vsyncadd (%p951_p12), %s726_s7, 4294967040  ;;  %s27_s20 = sadd.s32 1, %s1218_s20   ;;  %s1561_s28 = sld [smem:[#allocation17_spill]] }
 0x294   : > { %p24_p1 = scmp.ge.s32.totalorder %s27_s20, 4   ;;  %s1562_s18 = sld [smem:[#allocation15_spill]] }
 0x295   : > { %s1563_s19 = sld [smem:[#allocation16_spill]]  ;;  %s1564_s15 = smov %s1202_s16 }
 0x296   : > { %s1565_s16 = smov %s1206_s17  ;;  %26 = sbr.rel (!%p24_p1) target bundleno = 12 (0xc), region = 118 }
 0x299   : > { %s1566_s17 = smov %s1561_s28 }
 0x29b   :  { %731 = vsyncpa [#allocation3], 1 }
 0x29c   :  { %733 = vsyncpa [#allocation3 + $0x1], 1 }
 0x29d   :  { %734 = vsyncpa [#allocation6], 1 }
 0x29e   :  { %736 = vsyncpa [#allocation6 + $0x1], 1 }
 0x29f   :  { %737 = vsyncpa [#allocation4], 1 }
 0x2a0   :  { %739 = vsyncpa [#allocation4 + $0x1], 1 }
 0x2a1   :  { %740 = vsyncpa [#allocation10], 1 }
 0x2a2   :  { %742 = vsyncpa [#allocation10 + $0x1], 1 }

</bundles_post_ra>
